<compile_context>
chip_gen: v7x
topology: tpu7x:2x2x1
jax: 0.10.0
libtpu: 0.0.40
codegen_flags: <defaults>
</compile_context>

<pallas_src>
import functools

import jax
import jax.numpy as jnp
from jax.experimental import pallas as pl
from jax.experimental.pallas import tpu as pltpu


def _round_up(x, m):
    return (x + m - 1) // m * m


def _pick_batch_tile(B):
    """Batch tile: full batch when small, >=2 grid steps at midsize (both v7x
    TensorCores get work), 2048 at large B (amortizes ~0.35us/step)."""
    if B <= 512:
        return B                                   # one block == full dim
    if B <= 4096:
        return _round_up(pl.cdiv(B, 2), 16)        # two grid steps
    return 2048


def _critic_kernel(state_ref, action_ref, wb_ref, o_ref, *,
                   state_dim, action_dim, mid_dim_pad,
                   o_w1s, o_w1a, o_w2, o_w3, o_small):
    f32 = jnp.float32
    s = state_ref[...]                                   # (TB, S)  bf16
    a = action_ref[...]                                  # (TB, A)  bf16

    # Static, 16-row-aligned views into the packed bf16 weight blob.
    w1s = wb_ref[o_w1s:o_w1s + state_dim, :]             # (S, Mp)
    w1a = wb_ref[o_w1a:o_w1a + action_dim, :]            # (A, Mp)
    w2 = wb_ref[o_w2:o_w2 + mid_dim_pad, :]              # (Mp, Mp)
    w3 = wb_ref[o_w3:o_w3 + mid_dim_pad, :]              # (Mp, Mp)
    # Biases + final-layer row: one aligned 8-row load, upcast to f32 once.
    small = wb_ref[o_small:o_small + 8, :].astype(f32)   # (8, Mp)
    b1, b2, b3 = small[0:1, :], small[1:2, :], small[2:3, :]
    w4_row = small[3:4, :]                                # (1, Mp)
    b4 = small[4:5, 0:1]                                  # (1, 1)

    # Layer 1: fused concat([state, action]) via split first-layer weights.
    h = (jnp.dot(s, w1s, preferred_element_type=f32)
         + jnp.dot(a, w1a, preferred_element_type=f32) + b1)
    h = jnp.maximum(h, 0.0)                               # ReLU (f32 VPU)

    # Layer 2.
    h = jnp.dot(h.astype(jnp.bfloat16), w2, preferred_element_type=f32) + b2
    h = jnp.maximum(h, 0.0)                               # ReLU

    # Layer 3 + Hardswish: x * relu6(x + 3) / 6 (f32 VPU).
    h = jnp.dot(h.astype(jnp.bfloat16), w3, preferred_element_type=f32) + b3
    h = h * jnp.clip(h + 3.0, 0.0, 6.0) * (1.0 / 6.0)

    # Layer 4 (out_features = 1): VPU broadcast-mul + lane reduction instead
    # of a 1-row MXU dot (avoids transposing the whole (TB, Mp) tile).
    q = jnp.sum(h * w4_row, axis=-1, keepdims=True) + b4  # (TB, 1) f32
    o_ref[...] = q.astype(o_ref.dtype)


def pack_critic_params(params, state_dim, action_dim, mid_dim):
    """Pack all weights/biases into one bf16 (rows, Mp) blob (done ONCE).

    Row layout (16-row aligned for bf16 sublane packing), Mp = round_up(M,128):
      [o_w1s : +S ]  W1[:S]   (state rows of the first Linear)
      [o_w1a : +A ]  W1[S:]   (action rows of the first Linear)
      [o_w2  : +Mp]  W2  (zero-padded to Mp x Mp)
      [o_w3  : +Mp]  W3  (zero-padded to Mp x Mp)
      [o_small+0..4] b1, b2, b3, w4-as-row, b4-broadcast-row
    Weights are stored as [in_features, out_features] (transpose of torch).
    """
    w1, b1, w2, b2, w3, b3, w4, b4 = params
    M = mid_dim
    Mp = _round_up(max(M, 1), 128)
    o_w1s = 0
    o_w1a = o_w1s + _round_up(state_dim, 16)
    o_w2 = o_w1a + _round_up(action_dim, 16)
    o_w3 = o_w2 + Mp
    o_small = o_w3 + Mp
    rows = o_small + 16

    blob = jnp.zeros((rows, Mp), jnp.float32)
    blob = blob.at[o_w1s:o_w1s + state_dim, :M].set(w1[:state_dim, :])
    blob = blob.at[o_w1a:o_w1a + action_dim, :M].set(w1[state_dim:, :])
    blob = blob.at[o_w2:o_w2 + M, :M].set(w2)
    blob = blob.at[o_w3:o_w3 + M, :M].set(w3)
    blob = blob.at[o_small + 0, :M].set(b1.reshape(-1))
    blob = blob.at[o_small + 1, :M].set(b2.reshape(-1))
    blob = blob.at[o_small + 2, :M].set(b3.reshape(-1))
    blob = blob.at[o_small + 3, :M].set(w4.reshape(-1))
    blob = blob.at[o_small + 4, :].set(jnp.full((Mp,), b4.reshape(-1)[0]))

    offsets = dict(o_w1s=o_w1s, o_w1a=o_w1a, o_w2=o_w2,
                   o_w3=o_w3, o_small=o_small)
    return blob.astype(jnp.bfloat16), offsets


class CriticPallas:
    """Pallas TPU port of the MADDPG Critic (forward pass only)."""

    def __init__(self, params, state_dim, action_dim, mid_dim):
        self.state_dim = int(state_dim)
        self.action_dim = int(action_dim)
        self.mid_dim = int(mid_dim)
        self.mid_dim_pad = _round_up(max(self.mid_dim, 1), 128)
        # Packing is hoisted here: done once, reused across forward calls.
        self.wblob, self.offsets = pack_critic_params(
            params, self.state_dim, self.action_dim, self.mid_dim)
        self._single_buffer_weights = True   # flipped off if unsupported

    def _forward(self, state, action, TB, single_buffer_weights):
        B = state.shape[0]
        num_blocks = pl.cdiv(B, TB)          # ragged tail handled by Pallas

        kernel = functools.partial(
            _critic_kernel,
            state_dim=self.state_dim, action_dim=self.action_dim,
            mid_dim_pad=self.mid_dim_pad, **self.offsets)

        wshape = self.wblob.shape
        if single_buffer_weights:
            # Constant index_map -> blob is resident; single buffering avoids
            # duplicating it in VMEM (matters on v7x at large mid_dim).
            w_spec = pl.BlockSpec(wshape, lambda i: (0, 0),
                                  pipeline_mode=pl.Buffered(1))
        else:
            w_spec = pl.BlockSpec(wshape, lambda i: (0, 0))

        return pl.pallas_call(
            kernel,
            out_shape=jax.ShapeDtypeStruct((B, 1), jnp.float32),
            grid=(num_blocks,),
            in_specs=[
                pl.BlockSpec((TB, self.state_dim), lambda i: (i, 0)),
                pl.BlockSpec((TB, self.action_dim), lambda i: (i, 0)),
                w_spec,
            ],
            out_specs=pl.BlockSpec((TB, 1), lambda i: (i, 0)),
            compiler_params=pltpu.CompilerParams(
                dimension_semantics=("parallel",)),
        )(state, action, self.wblob)

    def __call__(self, state, action):
        # bf16 activations: half the HBM DMA bytes, native bf16 MXU path.
        # All accumulation / epilogue math stays f32 inside the kernel.
        state = state.astype(jnp.bfloat16)
        action = action.astype(jnp.bfloat16)
        TB = _pick_batch_tile(state.shape[0])
        while True:
            try:
                return self._forward(state, action, TB,
                                     self._single_buffer_weights)
            except Exception:
                if not self._single_buffer_weights:
                    raise
                # This jax build rejects pl.Buffered(1) for the resident
                # weight blob; fall back to default double buffering.
                self._single_buffer_weights = False


def init_critic_params(key, mid_dim, state_dim, action_dim):
    """Deterministic init mimicking nn.Linear's U(-1/sqrt(fan_in), ...)."""
    dims = [(state_dim + action_dim, mid_dim),
            (mid_dim, mid_dim),
            (mid_dim, mid_dim),
            (mid_dim, 1)]
    params = []
    for (fan_in, fan_out) in dims:
        key, kw, kb = jax.random.split(key, 3)
        bound = 1.0 / jnp.sqrt(fan_in)
        w = jax.random.uniform(kw, (fan_in, fan_out), jnp.float32, -bound, bound)
        b = jax.random.uniform(kb, (1, fan_out), jnp.float32, -bound, bound)
        params += [w, b]
    return tuple(params)


if __name__ == "__main__":
    mid_dim, state_dim, action_dim = 32, 16, 8
    batch = 8

    key = jax.random.PRNGKey(0)
    key, ks, ka, kp = jax.random.split(key, 4)
    state = jax.random.normal(ks, (batch, state_dim), jnp.float32)
    action = jax.random.normal(ka, (batch, action_dim), jnp.float32)
    params = init_critic_params(kp, mid_dim, state_dim, action_dim)

    critic = CriticPallas(params, state_dim, action_dim, mid_dim)
    q = critic(state, action)
    jax.block_until_ready(q)
    assert q.shape == (batch, 1)

    w1, b1, w2, b2, w3, b3, w4, b4 = params
    bf = jnp.bfloat16

    # Reference 1: identical bf16-matmul / f32-epilogue math in plain JAX.
    def f32b(x):  # f32 -> bf16 -> f32 round trip, matching the packed blob
        return x.astype(bf).astype(jnp.float32)

    h = (jnp.dot(state.astype(bf), w1[:state_dim].astype(bf),
                 preferred_element_type=jnp.float32)
         + jnp.dot(action.astype(bf), w1[state_dim:].astype(bf),
                   preferred_element_type=jnp.float32) + f32b(b1))
    h = jnp.maximum(h, 0.0)
    h = jnp.dot(h.astype(bf), w2.astype(bf),
                preferred_element_type=jnp.float32) + f32b(b2)
    h = jnp.maximum(h, 0.0)
    h = jnp.dot(h.astype(bf), w3.astype(bf),
                preferred_element_type=jnp.float32) + f32b(b3)
    h = h * jnp.clip(h + 3.0, 0.0, 6.0) * (1.0 / 6.0)
    q_ref_bf16 = (jnp.sum(h * f32b(w4.reshape(1, -1)), axis=-1, keepdims=True)
                  + f32b(b4))
    assert jnp.allclose(q, q_ref_bf16, atol=2e-3, rtol=2e-3), \
        "mismatch vs bf16-matched reference"

    # Reference 2: full-f32 torch-equivalent math (loose bf16 tolerance).
    x = jnp.concatenate([state, action], axis=1)
    h = jnp.maximum(x @ w1 + b1, 0.0)
    h = jnp.maximum(h @ w2 + b2, 0.0)
    h = h @ w3 + b3
    h = h * jnp.clip(h + 3.0, 0.0, 6.0) / 6.0
    q_ref_f32 = h @ w4 + b4
    assert jnp.allclose(q, q_ref_f32, atol=5e-2, rtol=5e-2), \
        "mismatch vs f32 reference"

    print("KERNEL_OK")
</pallas_src>

<mosaic_0001>
module attributes {stable_mosaic.version = 11 : i64} {
  func.func @_critic_kernel(%arg0: i32, %arg1: memref<8x16xbf16, #tpu.memory_space<vmem>>, %arg2: memref<8x8xbf16, #tpu.memory_space<vmem>>, %arg3: memref<304x128xbf16, #tpu.memory_space<vmem>>, %arg4: memref<8x1xf32, #tpu.memory_space<vmem>>) attributes {dimension_semantics = [#tpu.dimension_semantics<parallel>], iteration_bounds = array<i64: 1>, scalar_prefetch = 0 : i64, scratch_operands = 0 : i64, tpu.core_type = #tpu.core_type<tc>, window_params = [{transform_indices = @transform_0, window_bounds = array<i64: 8, 16>}, {transform_indices = @transform_1, window_bounds = array<i64: 8, 8>}, {pipeline_mode = #tpu.pipeline_mode<synchronous>, transform_indices = @transform_2, window_bounds = array<i64: 304, 128>}, {transform_indices = @transform_3, window_bounds = array<i64: 8, 1>}]} {
    %c0 = arith.constant 0 : index
    %c0_0 = arith.constant 0 : index
    %0 = vector.load %arg1[%c0, %c0_0] : memref<8x16xbf16, #tpu.memory_space<vmem>>, vector<8x16xbf16>
    %c0_1 = arith.constant 0 : index
    %c0_2 = arith.constant 0 : index
    %1 = vector.load %arg2[%c0_1, %c0_2] : memref<8x8xbf16, #tpu.memory_space<vmem>>, vector<8x8xbf16>
    %c0_3 = arith.constant 0 : index
    %c0_4 = arith.constant 0 : index
    %2 = vector.load %arg3[%c0_3, %c0_4] : memref<304x128xbf16, #tpu.memory_space<vmem>>, vector<16x128xbf16>
    %c16 = arith.constant 16 : index
    %c0_5 = arith.constant 0 : index
    %3 = vector.load %arg3[%c16, %c0_5] : memref<304x128xbf16, #tpu.memory_space<vmem>>, vector<8x128xbf16>
    %c32 = arith.constant 32 : index
    %c0_6 = arith.constant 0 : index
    %4 = vector.load %arg3[%c32, %c0_6] : memref<304x128xbf16, #tpu.memory_space<vmem>>, vector<128x128xbf16>
    %c160 = arith.constant 160 : index
    %c0_7 = arith.constant 0 : index
    %5 = vector.load %arg3[%c160, %c0_7] : memref<304x128xbf16, #tpu.memory_space<vmem>>, vector<128x128xbf16>
    %c288 = arith.constant 288 : index
    %c0_8 = arith.constant 0 : index
    %6 = vector.load %arg3[%c288, %c0_8] : memref<304x128xbf16, #tpu.memory_space<vmem>>, vector<8x128xbf16>
    %7 = arith.extf %6 : vector<8x128xbf16> to vector<8x128xf32>
    %8 = vector.extract_strided_slice %7 {offsets = [0, 0], sizes = [1, 128], strides = [1, 1]} : vector<8x128xf32> to vector<1x128xf32>
    %9 = vector.extract_strided_slice %7 {offsets = [1, 0], sizes = [1, 128], strides = [1, 1]} : vector<8x128xf32> to vector<1x128xf32>
    %10 = vector.extract_strided_slice %7 {offsets = [2, 0], sizes = [1, 128], strides = [1, 1]} : vector<8x128xf32> to vector<1x128xf32>
    %11 = vector.extract_strided_slice %7 {offsets = [3, 0], sizes = [1, 128], strides = [1, 1]} : vector<8x128xf32> to vector<1x128xf32>
    %12 = vector.extract_strided_slice %7 {offsets = [4, 0], sizes = [1, 1], strides = [1, 1]} : vector<8x128xf32> to vector<1x1xf32>
    %cst = arith.constant dense<0.000000e+00> : vector<8x128xf32>
    %13 = tpu.matmul %0, %2, %cst {dimension_numbers = #tpu.dot_dimension_numbers<[1], [0], [0], [1], [0, 0, 1, 1], [], []>} : vector<8x16xbf16>, vector<16x128xbf16>, vector<8x128xf32> -> vector<8x128xf32>
    %cst_9 = arith.constant dense<0.000000e+00> : vector<8x128xf32>
    %14 = tpu.matmul %1, %3, %cst_9 {dimension_numbers = #tpu.dot_dimension_numbers<[1], [0], [0], [1], [0, 0, 1, 1], [], []>} : vector<8x8xbf16>, vector<8x128xbf16>, vector<8x128xf32> -> vector<8x128xf32>
    %15 = arith.addf %13, %14 : vector<8x128xf32>
    %16 = vector.broadcast %8 : vector<1x128xf32> to vector<8x128xf32>
    %17 = arith.addf %15, %16 : vector<8x128xf32>
    %cst_10 = arith.constant 0.000000e+00 : f32
    %18 = vector.broadcast %cst_10 : f32 to vector<8x128xf32>
    %19 = arith.maximumf %17, %18 : vector<8x128xf32>
    %20 = arith.truncf %19 : vector<8x128xf32> to vector<8x128xbf16>
    %cst_11 = arith.constant dense<0.000000e+00> : vector<8x128xf32>
    %21 = tpu.matmul %20, %4, %cst_11 {dimension_numbers = #tpu.dot_dimension_numbers<[1], [0], [0], [1], [0, 0, 1, 1], [], []>} : vector<8x128xbf16>, vector<128x128xbf16>, vector<8x128xf32> -> vector<8x128xf32>
    %22 = vector.broadcast %9 : vector<1x128xf32> to vector<8x128xf32>
    %23 = arith.addf %21, %22 : vector<8x128xf32>
    %cst_12 = arith.constant 0.000000e+00 : f32
    %24 = vector.broadcast %cst_12 : f32 to vector<8x128xf32>
    %25 = arith.maximumf %23, %24 : vector<8x128xf32>
    %26 = arith.truncf %25 : vector<8x128xf32> to vector<8x128xbf16>
    %cst_13 = arith.constant dense<0.000000e+00> : vector<8x128xf32>
    %27 = tpu.matmul %26, %5, %cst_13 {dimension_numbers = #tpu.dot_dimension_numbers<[1], [0], [0], [1], [0, 0, 1, 1], [], []>} : vector<8x128xbf16>, vector<128x128xbf16>, vector<8x128xf32> -> vector<8x128xf32>
    %28 = vector.broadcast %10 : vector<1x128xf32> to vector<8x128xf32>
    %29 = arith.addf %27, %28 : vector<8x128xf32>
    %cst_14 = arith.constant 3.000000e+00 : f32
    %30 = vector.broadcast %cst_14 : f32 to vector<8x128xf32>
    %31 = arith.addf %29, %30 : vector<8x128xf32>
    %cst_15 = arith.constant 0.000000e+00 : f32
    %cst_16 = arith.constant 6.000000e+00 : f32
    %32 = vector.broadcast %cst_15 : f32 to vector<8x128xf32>
    %33 = arith.maximumf %32, %31 : vector<8x128xf32>
    %34 = vector.broadcast %cst_16 : f32 to vector<8x128xf32>
    %35 = arith.minimumf %34, %33 : vector<8x128xf32>
    %36 = arith.mulf %29, %35 : vector<8x128xf32>
    %cst_17 = arith.constant 0.166666672 : f32
    %37 = vector.broadcast %cst_17 : f32 to vector<8x128xf32>
    %38 = arith.mulf %36, %37 : vector<8x128xf32>
    %39 = vector.broadcast %11 : vector<1x128xf32> to vector<8x128xf32>
    %40 = arith.mulf %38, %39 : vector<8x128xf32>
    %cst_18 = arith.constant dense<0.000000e+00> : vector<8xf32>
    %41 = vector.multi_reduction <add>, %40, %cst_18 [1] : vector<8x128xf32> to vector<8xf32>
    %42 = vector.shape_cast %41 : vector<8xf32> to vector<8x1xf32>
    %43 = vector.broadcast %12 : vector<1x1xf32> to vector<8x1xf32>
    %44 = arith.addf %42, %43 : vector<8x1xf32>
    %c0_19 = arith.constant 0 : index
    %c0_20 = arith.constant 0 : index
    %45 = vector.load %arg4[%c0_19, %c0_20] : memref<8x1xf32, #tpu.memory_space<vmem>>, vector<8x1xf32>
    tpu.vector_store %arg4[%c0_19, %c0_20], %44 {strides = array<i32>} : memref<8x1xf32, #tpu.memory_space<vmem>>, vector<8x1xf32>,
    return
  }
  func.func @transform_0(%arg0: i32) -> (i32, i32) {
    %c0_i32 = arith.constant 0 : i32
    %c0_i32_0 = arith.constant 0 : i32
    return %arg0, %c0_i32 : i32, i32
  }
  func.func @transform_1(%arg0: i32) -> (i32, i32) {
    %c0_i32 = arith.constant 0 : i32
    %c0_i32_0 = arith.constant 0 : i32
    return %arg0, %c0_i32 : i32, i32
  }
  func.func @transform_2(%arg0: i32) -> (i32, i32) {
    %c0_i32 = arith.constant 0 : i32
    %c0_i32_0 = arith.constant 0 : i32
    %c0_i32_1 = arith.constant 0 : i32
    return %c0_i32, %c0_i32_0 : i32, i32
  }
  func.func @transform_3(%arg0: i32) -> (i32, i32) {
    %c0_i32 = arith.constant 0 : i32
    %c0_i32_0 = arith.constant 0 : i32
    return %arg0, %c0_i32 : i32, i32
  }
}

module attributes {stable_mosaic.version = 11 : i64} {
  func.func @_critic_kernel(%arg0: i32, %arg1: memref<8x16xbf16, #tpu.memory_space<vmem>>, %arg2: memref<8x8xbf16, #tpu.memory_space<vmem>>, %arg3: memref<304x128xbf16, #tpu.memory_space<vmem>>, %arg4: memref<8x1xf32, #tpu.memory_space<vmem>>) attributes {dimension_semantics = [#tpu.dimension_semantics<parallel>], iteration_bounds = array<i64: 1>, scalar_prefetch = 0 : i64, scratch_operands = 0 : i64, tpu.core_type = #tpu.core_type<tc>, window_params = [{transform_indices = @transform_0, window_bounds = array<i64: 8, 16>}, {transform_indices = @transform_1, window_bounds = array<i64: 8, 8>}, {pipeline_mode = #tpu.pipeline_mode<synchronous>, transform_indices = @transform_2, window_bounds = array<i64: 304, 128>}, {transform_indices = @transform_3, window_bounds = array<i64: 8, 1>}]} {
    %c0 = arith.constant 0 : index
    %c0_0 = arith.constant 0 : index
    %0 = vector.load %arg1[%c0, %c0_0] : memref<8x16xbf16, #tpu.memory_space<vmem>>, vector<8x16xbf16>
    %c0_1 = arith.constant 0 : index
    %c0_2 = arith.constant 0 : index
    %1 = vector.load %arg2[%c0_1, %c0_2] : memref<8x8xbf16, #tpu.memory_space<vmem>>, vector<8x8xbf16>
    %c0_3 = arith.constant 0 : index
    %c0_4 = arith.constant 0 : index
    %2 = vector.load %arg3[%c0_3, %c0_4] : memref<304x128xbf16, #tpu.memory_space<vmem>>, vector<16x128xbf16>
    %c16 = arith.constant 16 : index
    %c0_5 = arith.constant 0 : index
    %3 = vector.load %arg3[%c16, %c0_5] : memref<304x128xbf16, #tpu.memory_space<vmem>>, vector<8x128xbf16>
    %c32 = arith.constant 32 : index
    %c0_6 = arith.constant 0 : index
    %4 = vector.load %arg3[%c32, %c0_6] : memref<304x128xbf16, #tpu.memory_space<vmem>>, vector<128x128xbf16>
    %c160 = arith.constant 160 : index
    %c0_7 = arith.constant 0 : index
    %5 = vector.load %arg3[%c160, %c0_7] : memref<304x128xbf16, #tpu.memory_space<vmem>>, vector<128x128xbf16>
    %c288 = arith.constant 288 : index
    %c0_8 = arith.constant 0 : index
    %6 = vector.load %arg3[%c288, %c0_8] : memref<304x128xbf16, #tpu.memory_space<vmem>>, vector<8x128xbf16>
    %7 = arith.extf %6 : vector<8x128xbf16> to vector<8x128xf32>
    %8 = vector.extract_strided_slice %7 {offsets = [0, 0], sizes = [1, 128], strides = [1, 1]} : vector<8x128xf32> to vector<1x128xf32>
    %9 = vector.extract_strided_slice %7 {offsets = [1, 0], sizes = [1, 128], strides = [1, 1]} : vector<8x128xf32> to vector<1x128xf32>
    %10 = vector.extract_strided_slice %7 {offsets = [2, 0], sizes = [1, 128], strides = [1, 1]} : vector<8x128xf32> to vector<1x128xf32>
    %11 = vector.extract_strided_slice %7 {offsets = [3, 0], sizes = [1, 128], strides = [1, 1]} : vector<8x128xf32> to vector<1x128xf32>
    %12 = vector.extract_strided_slice %7 {offsets = [4, 0], sizes = [1, 1], strides = [1, 1]} : vector<8x128xf32> to vector<1x1xf32>
    %cst = arith.constant dense<0.000000e+00> : vector<8x128xf32>
    %13 = tpu.matmul %0, %2, %cst {dimension_numbers = #tpu.dot_dimension_numbers<[1], [0], [0], [1], [0, 0, 1, 1], [], []>} : vector<8x16xbf16>, vector<16x128xbf16>, vector<8x128xf32> -> vector<8x128xf32>
    %cst_9 = arith.constant dense<0.000000e+00> : vector<8x128xf32>
    %14 = tpu.matmul %1, %3, %cst_9 {dimension_numbers = #tpu.dot_dimension_numbers<[1], [0], [0], [1], [0, 0, 1, 1], [], []>} : vector<8x8xbf16>, vector<8x128xbf16>, vector<8x128xf32> -> vector<8x128xf32>
    %15 = arith.addf %13, %14 : vector<8x128xf32>
    %16 = vector.broadcast %8 : vector<1x128xf32> to vector<8x128xf32>
    %17 = arith.addf %15, %16 : vector<8x128xf32>
    %cst_10 = arith.constant 0.000000e+00 : f32
    %18 = vector.broadcast %cst_10 : f32 to vector<8x128xf32>
    %19 = arith.maximumf %17, %18 : vector<8x128xf32>
    %20 = arith.truncf %19 : vector<8x128xf32> to vector<8x128xbf16>
    %cst_11 = arith.constant dense<0.000000e+00> : vector<8x128xf32>
    %21 = tpu.matmul %20, %4, %cst_11 {dimension_numbers = #tpu.dot_dimension_numbers<[1], [0], [0], [1], [0, 0, 1, 1], [], []>} : vector<8x128xbf16>, vector<128x128xbf16>, vector<8x128xf32> -> vector<8x128xf32>
    %22 = vector.broadcast %9 : vector<1x128xf32> to vector<8x128xf32>
    %23 = arith.addf %21, %22 : vector<8x128xf32>
    %cst_12 = arith.constant 0.000000e+00 : f32
    %24 = vector.broadcast %cst_12 : f32 to vector<8x128xf32>
    %25 = arith.maximumf %23, %24 : vector<8x128xf32>
    %26 = arith.truncf %25 : vector<8x128xf32> to vector<8x128xbf16>
    %cst_13 = arith.constant dense<0.000000e+00> : vector<8x128xf32>
    %27 = tpu.matmul %26, %5, %cst_13 {dimension_numbers = #tpu.dot_dimension_numbers<[1], [0], [0], [1], [0, 0, 1, 1], [], []>} : vector<8x128xbf16>, vector<128x128xbf16>, vector<8x128xf32> -> vector<8x128xf32>
    %28 = vector.broadcast %10 : vector<1x128xf32> to vector<8x128xf32>
    %29 = arith.addf %27, %28 : vector<8x128xf32>
    %cst_14 = arith.constant 3.000000e+00 : f32
    %30 = vector.broadcast %cst_14 : f32 to vector<8x128xf32>
    %31 = arith.addf %29, %30 : vector<8x128xf32>
    %cst_15 = arith.constant 0.000000e+00 : f32
    %cst_16 = arith.constant 6.000000e+00 : f32
    %32 = vector.broadcast %cst_15 : f32 to vector<8x128xf32>
    %33 = arith.maximumf %32, %31 : vector<8x128xf32>
    %34 = vector.broadcast %cst_16 : f32 to vector<8x128xf32>
    %35 = arith.minimumf %34, %33 : vector<8x128xf32>
    %36 = arith.mulf %29, %35 : vector<8x128xf32>
    %cst_17 = arith.constant 0.166666672 : f32
    %37 = vector.broadcast %cst_17 : f32 to vector<8x128xf32>
    %38 = arith.mulf %36, %37 : vector<8x128xf32>
    %39 = vector.broadcast %11 : vector<1x128xf32> to vector<8x128xf32>
    %40 = arith.mulf %38, %39 : vector<8x128xf32>
    %cst_18 = arith.constant dense<0.000000e+00> : vector<8xf32>
    %41 = vector.multi_reduction <add>, %40, %cst_18 [1] : vector<8x128xf32> to vector<8xf32>
    %42 = vector.shape_cast %41 : vector<8xf32> to vector<8x1xf32>
    %43 = vector.broadcast %12 : vector<1x1xf32> to vector<8x1xf32>
    %44 = arith.addf %42, %43 : vector<8x1xf32>
    %c0_19 = arith.constant 0 : index
    %c0_20 = arith.constant 0 : index
    %45 = vector.load %arg4[%c0_19, %c0_20] : memref<8x1xf32, #tpu.memory_space<vmem>>, vector<8x1xf32>
    tpu.vector_store %arg4[%c0_19, %c0_20], %44 {strides = array<i32>} : memref<8x1xf32, #tpu.memory_space<vmem>>, vector<8x1xf32>,
    return
  }
  func.func @transform_0(%arg0: i32) -> (i32, i32) {
    %c0_i32 = arith.constant 0 : i32
    %c0_i32_0 = arith.constant 0 : i32
    return %arg0, %c0_i32 : i32, i32
  }
  func.func @transform_1(%arg0: i32) -> (i32, i32) {
    %c0_i32 = arith.constant 0 : i32
    %c0_i32_0 = arith.constant 0 : i32
    return %arg0, %c0_i32 : i32, i32
  }
  func.func @transform_2(%arg0: i32) -> (i32, i32) {
    %c0_i32 = arith.constant 0 : i32
    %c0_i32_0 = arith.constant 0 : i32
    %c0_i32_1 = arith.constant 0 : i32
    return %c0_i32, %c0_i32_0 : i32, i32
  }
  func.func @transform_3(%arg0: i32) -> (i32, i32) {
    %c0_i32 = arith.constant 0 : i32
    %c0_i32_0 = arith.constant 0 : i32
    return %arg0, %c0_i32 : i32, i32
  }
}

</mosaic_0001>

<bundles_post_ra>
// kernel: tpu_custom_call.1
= control target key start
LH: loop header
LB: loop body
LE: loop exit
PB: predicated region body
PF: predicated region fallthrough
CT: control target
= control target key end

     0   :  { %8 = vsyncpa [#allocation3], 0  ;;  %s686_s0 = inlined_call_operand.hbm [shape: bf16[8,16], index: 0, kind: input, shape index: {}]   ;;  %s687_s1 = inlined_call_operand.hbm [shape: bf16[8,8], index: 1, kind: input, shape index: {}]   ;;  %s688_s2 = inlined_call_operand.hbm [shape: bf16[304,128], index: 2, kind: input, shape index: {}]   ;;  %s689_s3 = inlined_call_operand.vmem [shape: f32[8,1], index: 3, kind: output, shape index: {}]  }
   0x1   :  { %9 = vsyncpa [#allocation5], 0  ;;  %s594_s12 = smov [#allocation4]   ;;  %s595_s14 = smov [#allocation2]  }
   0x2   :  { %s26_s13 = sshll.u32 %s594_s12, 4  ;;  %s16_s15 = sshll.u32 %s595_s14, 4  ;;  %s27_s13 = int_to_ptr.vmem [resolvable:$true] %s26_s13  ;;  %s17_s15 = int_to_ptr.vmem [resolvable:$true] %s16_s15 }
   0x3   :  { %s524_s18 = scalar_lea.hbm %s687_s1, 64 }
   0x4   :  { %p525_p0 = scmp.ne.s32.totalorder %s687_s1, %s524_s18  ;;  %p528_p1 = scmp.lt.u32.totalorder %s524_s18, %s687_s1 }
   0x6   :  { %p530_p2 = pnand %p528_p1, %p525_p0 }
   0x8   :  { %533 = shalt.err (!%p530_p2)
}
   0x9   :  { %s534_s23 = scalar_lea.vmem %s27_s13, 64  ;;  %p539_p4 = scmp.lt.s32.totalorder %s27_s13, %s27_s13 }
   0xa   :  { %p535_p3 = scmp.ne.s32.totalorder %s27_s13, %s534_s23  ;;  %p540_p5 = scmp.lt.s32.totalorder %s534_s23, %s534_s23 }
   0xc   :  { %p541_p6 = por %p540_p5, %p539_p4 }
   0xe   :  { %p542_p7 = pnand %p541_p6, %p535_p3 }
  0x10   :  { %545 = shalt.err (!%p542_p7)
}
  0x11   :  { %29 = dma.hbm_to_vmem [thread:$0]  %s687_s1, 64, %s27_s13, [#allocation5]  }
  0x12   :  { %s546_s28 = scalar_lea.hbm %s686_s0, 64 }
  0x13   :  { %p547_p8 = scmp.ne.s32.totalorder %s686_s0, %s546_s28  ;;  %p550_p9 = scmp.lt.u32.totalorder %s546_s28, %s686_s0 }
  0x15   :  { %p552_p10 = pnand %p550_p9, %p547_p8 }
  0x17   :  { %555 = shalt.err (!%p552_p10)
}
  0x18   :  { %s556_s6 = scalar_lea.vmem %s17_s15, 64  ;;  %p561_p12 = scmp.lt.s32.totalorder %s17_s15, %s17_s15 }
  0x19   :  { %p557_p11 = scmp.ne.s32.totalorder %s17_s15, %s556_s6  ;;  %p562_p13 = scmp.lt.s32.totalorder %s556_s6, %s556_s6 }
  0x1b   :  { %p563_p0 = por %p562_p13, %p561_p12 }
  0x1d   :  { %p564_p1 = pnand %p563_p0, %p557_p11 }
  0x1f   :  { %567 = shalt.err (!%p564_p1)
}
  0x20   :  { %19 = dma.hbm_to_vmem [thread:$0]  %s686_s0, 64, %s17_s15, [#allocation3]  }
  0x21   :  { %s596_s8 = smov [#allocation6]   ;;  %s568_s12 = scalar_lea.hbm %s688_s2, 2432 }
  0x22   :  { %s35_s9 = sshll.u32 %s596_s8, 4  ;;  %p569_p2 = scmp.ne.s32.totalorder %s688_s2, %s568_s12  ;;  %s36_s9 = int_to_ptr.vmem [resolvable:$true] %s35_s9 }
  0x23   :  { %p572_p3 = scmp.lt.u32.totalorder %s568_s12, %s688_s2 }
  0x25   :  { %p574_p4 = pnand %p572_p3, %p569_p2 }
  0x27   :  { %577 = shalt.err (!%p574_p4)
}
  0x28   :  { %s578_s18 = scalar_lea.vmem %s36_s9, 2432  ;;  %p583_p6 = scmp.lt.s32.totalorder %s36_s9, %s36_s9 }
  0x29   :  { %p579_p5 = scmp.ne.s32.totalorder %s36_s9, %s578_s18  ;;  %p584_p7 = scmp.lt.s32.totalorder %s578_s18, %s578_s18 }
  0x2b   :  { %p585_p8 = por %p584_p7, %p583_p6 }
  0x2d   :  { %p586_p9 = pnand %p585_p8, %p579_p5 }
  0x2f   :  { %589 = shalt.err (!%p586_p9)
}
  0x30   :  { %s597_s0 = smov 64   ;;  %s598_s15 = smov 4  }
  0x31   :  { %41 = dma.hbm_to_vmem [thread:$0]  %s688_s2, 2432, %s36_s9, [#allocation5], %s597_s0, %s597_s0, %s598_s15  }
  0x32   :  { %590 = dma.done.wait [#allocation3], 64  }
  0x33   :  { %591 = vsyncadd [#allocation3], 4294967232 }
  0x34   :  { %592 = dma.done.wait [#allocation5], 2496  }
  0x35   :  { %593 = vsyncadd [#allocation5], 4294964800  ;;  %v599_v0 = vmov 0.0   ;;  %vm600_vm0 = vmmov 0   ;;  %vm95_vm1 = vcmask 1043456   ;;  %v507_v3 = vld [vmem:[#allocation6] sm:$0xff]   ;;  %v189_v20 = vlaneseq }
  0x36   :  { %448 = vmatprep.subr.bf16.mxu0 %v599_v0  ;;  %454 = vmatprep.subr.bf16.mxu1 %v599_v0  ;;  %v56_v1 = vld [vmem:[#allocation6 + $0x8] sm:$0xf]  ;;  %v53_v4 = vld [vmem:[#allocation4] sm:$0xf]  ;;  %vm91_vm2 = vcmask 64512   ;;  %vm145_vm3 = vcmask 130048  }
  0x37   :  { %450 = vmatprep.mubr.msk.bf16.mxu0 %vm600_vm0, %v599_v0  ;;  %456 = vmatprep.mubr.msk.bf16.mxu1 %vm600_vm0, %v599_v0  ;;  %v97_v2 = vsel %vm95_vm1, %v56_v1, 0  ;;  %v508_v5 = vld [vmem:[#allocation6 + $0x10] sm:$0xff]   ;;  %v52_v6 = vld [vmem:[#allocation2] sm:$0xf]  ;;  %v510_v8 = vld [vmem:[#allocation6 + $0x20] sm:$0xff]   ;;  %v190_v21 = vshrl.u32 %v189_v20, 7 }
  0x38   :  { %449 = vmatpush3.bf16.msra.mxu0 %v97_v2  ;;  %455 = vmatpush3.bf16.msra.mxu1 %v507_v3  ;;  %v509_v7 = vld [vmem:[#allocation6 + $0x18] sm:$0xff]   ;;  %v511_v9 = vld [vmem:[#allocation6 + $0x28] sm:$0xff]   ;;  %v512_v10 = vld [vmem:[#allocation6 + $0x30] sm:$0xff]   ;;  %vm399_vm4 = vcmask 7168  }
  0x39   :  { %460 = vmatprep.subr.bf16.mxu0 %v599_v0  ;;  %480 = vmatprep.subr.bf16.mxu1 %v599_v0  ;;  %v513_v11 = vld [vmem:[#allocation6 + $0x38] sm:$0xff]   ;;  %v514_v12 = vld [vmem:[#allocation6 + $0x40] sm:$0xff]   ;;  %v515_v13 = vld [vmem:[#allocation6 + $0x48] sm:$0xff]   ;;  %v191_v24 = vsub.s32 0, %v190_v21  ;;  %v198_v40 = vsub.s32 1, %v190_v21  ;;  %v292_v49 = vsub.s32 2, %v190_v21 }
  0x3a   :  { %v516_v14 = vld [vmem:[#allocation6 + $0x50] sm:$0xff]   ;;  %v517_v15 = vld [vmem:[#allocation6 + $0x58] sm:$0xff]   ;;  %v518_v16 = vld [vmem:[#allocation6 + $0x60] sm:$0xff]   ;;  %v389_v58 = vsub.s32 3, %v190_v21 }
  0x3b   :  { %451 = vmatmul.mubr.msk.bf16.vlgmr.msra.gmra.mrb[0].mxu0 %vm91_vm2, %v53_v4  ;;  %457 = vmatmul.mubr.msk.bf16.vlgmr.msra.gmra.mrb[0].mxu1 %vm145_vm3, %v52_v6  ;;  %v519_v17 = vld [vmem:[#allocation6 + $0x68] sm:$0xff]   ;;  %v520_v18 = vld [vmem:[#allocation6 + $0x70] sm:$0xff]   ;;  %v521_v19 = vld [vmem:[#allocation6 + $0x78] sm:$0xff]  }
  0x3c   :  { %461 = vmatpush3.bf16.msra.mxu0 %v508_v5  ;;  %476 = vmatprep.mubr.msk.bf16.mxu0 %vm600_vm0, %v599_v0  ;;  %v89_v22 = vld [vmem:[#allocation6 + $0x90] sm:$0xf]  ;;  %v522_v38 = vld [vmem:[#allocation6 + $0x80] sm:$0xff]   ;;  %v523_v39 = vld [vmem:[#allocation6 + $0x88] sm:$0xff]  }
  0x3d   :  { %462 = vmatprep.subr.bf16.mxu0 %v599_v0  ;;  %496 = vmatprep.mubr.msk.bf16.mxu1 %vm600_vm0, %v599_v0  ;;  %v90_v23 = vunpack.c.l.bf16 %v89_v22 }
  0x3e   :  { %481 = vmatpush3.bf16.msra.mxu1 %v516_v14 }
  0x3f   :  { %482 = vmatprep.subr.bf16.mxu1 %v599_v0  ;;  %v192_v26 = vrot.slane %v90_v23, %v191_v24  ;;  %v199_v41 = vrot.slane %v90_v23, %v198_v40  ;;  %v293_v50 = vrot.slane %v90_v23, %v292_v49  ;;  %v390_v61 = vrot.slane %v90_v23, %v389_v58 }
  0x40   :  { %463 = vmatpush3.bf16.msra.mxu0 %v509_v7 }
  0x41   :  { %464 = vmatprep.subr.bf16.mxu0 %v599_v0 }
  0x42   :  { %483 = vmatpush3.bf16.msra.mxu1 %v517_v15 }
  0x43   :  { %484 = vmatprep.subr.bf16.mxu1 %v599_v0 }
  0x44   :  { %465 = vmatpush3.bf16.msra.mxu0 %v510_v8 }
  0x45   :  { %466 = vmatprep.subr.bf16.mxu0 %v599_v0 }
  0x46   :  { %485 = vmatpush3.bf16.msra.mxu1 %v518_v16 }
  0x47   :  { %486 = vmatprep.subr.bf16.mxu1 %v599_v0 }
  0x48   :  { %467 = vmatpush3.bf16.msra.mxu0 %v511_v9 }
  0x49   :  { %468 = vmatprep.subr.bf16.mxu0 %v599_v0 }
  0x4a   :  { %487 = vmatpush3.bf16.msra.mxu1 %v519_v17 }
  0x4b   :  { %488 = vmatprep.subr.bf16.mxu1 %v599_v0 }
  0x4c   :  { %469 = vmatpush3.bf16.msra.mxu0 %v512_v10 }
  0x4d   :  { %470 = vmatprep.subr.bf16.mxu0 %v599_v0 }
  0x4e   :  { %489 = vmatpush3.bf16.msra.mxu1 %v520_v18 }
  0x4f   :  { %490 = vmatprep.subr.bf16.mxu1 %v599_v0 }
  0x50   :  { %471 = vmatpush3.bf16.msra.mxu0 %v513_v11 }
  0x51   :  { %472 = vmatprep.subr.bf16.mxu0 %v599_v0 }
  0x52   :  { %491 = vmatpush3.bf16.msra.mxu1 %v521_v19 }
  0x53   :  { %492 = vmatprep.subr.bf16.mxu1 %v599_v0 }
  0x54   :  { %473 = vmatpush3.bf16.msra.mxu0 %v514_v12 }
  0x55   :  { %474 = vmatprep.subr.bf16.mxu0 %v599_v0 }
  0x56   :  { %493 = vmatpush3.bf16.msra.mxu1 %v522_v38 }
  0x57   :  { %494 = vmatprep.subr.bf16.mxu1 %v599_v0  ;;  %v396_v0 = vsub.s32 4, %v190_v21 }
  0x58   :  { %475 = vmatpush3.bf16.msra.mxu0 %v515_v13 }
  0x59   :  { %v397_v1 = vrot.slane %v90_v23, %v396_v0 }
  0x5a   :  { %495 = vmatpush3.bf16.msra.mxu1 %v523_v39 }
 0x10e   :  { %v133_v25 = vpop.f32.mrb[0].mxu0  ;;  %v183_v28 = vpop.f32.mrb[0].mxu1 }
 0x10f   :  { %v452_v27 = vpop.f32.mrb[1].mxu0  ;;  %v184_v29 = vadd.f32 %v183_v28, %v133_v25  ;;  %v458_v31 = vpop.f32.mrb[1].mxu1 }
 0x110   :  { %v136_v30 = vpop.f32.mrb[2].mxu0  ;;  %v186_v33 = vpop.f32.mrb[2].mxu1 }
 0x111   :  { %v453_v32 = vpop.f32.mrb[3].mxu0  ;;  %v193_v34 = vadd.f32 %v192_v26, %v184_v29  ;;  %v459_v35 = vpop.f32.mrb[3].mxu1 }
 0x113   :  { %v194_v36 = vmax.f32 %v193_v34, 0.0 }
 0x115   :  { %v195_v37 = vpack.c.bf16 %v194_v36, %v194_v36 }
 0x117   :  { %477 = vmatmul.mubr.bf16.vlgmr.msra.gmra.mrb[4].mxu0 %v195_v37 }
 0x1ea   :  { %v282_v42 = vpop.f32.mrb[4].mxu0 }
 0x1eb   :  { %v283_v43 = vadd.f32 %v282_v42, %v199_v41  ;;  %v478_v44 = vpop.f32.mrb[5].mxu0 }
 0x1ec   :  { %v285_v45 = vpop.f32.mrb[6].mxu0 }
 0x1ed   :  { %v288_v46 = vmax.f32 %v283_v43, 0.0  ;;  %v479_v47 = vpop.f32.mrb[7].mxu0 }
 0x1ef   :  { %v289_v48 = vpack.c.bf16 %v288_v46, %v288_v46 }
 0x1f1   :  { %497 = vmatmul.mubr.bf16.vlgmr.msra.gmra.mrb[4].mxu1 %v289_v48 }
 0x2c4   :  { %v376_v51 = vpop.f32.mrb[4].mxu1 }
 0x2c5   :  { %v377_v52 = vadd.f32 %v376_v51, %v293_v50  ;;  %v498_v53 = vpop.f32.mrb[5].mxu1 }
 0x2c6   :  { %v379_v54 = vpop.f32.mrb[6].mxu1 }
 0x2c7   :  { %v382_v55 = vadd.f32 3.0, %v377_v52  ;;  %v499_v56 = vpop.f32.mrb[7].mxu1 }
 0x2c9   :  { %v383_v57 = vmax.f32 %v382_v55, 0.0 }
 0x2cb   :  { %v384_v59 = vmin.f32 %v383_v57, 6.0 }
 0x2cd   :  { %v385_v60 = vmul.f32 %v384_v59, %v377_v52 }
 0x2cf   :  { %v386_v62 = vmul.f32 0.16666667, %v385_v60 }
 0x2d1   :  { %v391_v63 = vmul.f32 %v390_v61, %v386_v62 }
 0x2d3   :  { %392 = vadd.xlane.f32.xlu0 %v391_v63 }
 0x360   :  { %v393_v2 = vpop.xlane.xlu0 %392 }
 0x361   :  { %v398_v3 = vadd.f32 %v397_v1, %v393_v2 }
 0x363   :  { %400 = vst.msk [vmem:[%s689_s3] sm:$0xff] %vm399_vm4, %v398_v3 }
 0x364   :  { %405 = vsyncpa [#allocation3], 1 }
 0x365   :  { %406 = vsyncpa [#allocation5], 1 }

// kernel: tpu_custom_call.1
= control target key start
LH: loop header
LB: loop body
LE: loop exit
PB: predicated region body
PF: predicated region fallthrough
CT: control target
= control target key end

     0   :  { %8 = vsyncpa [#allocation3], 0  ;;  %s686_s0 = inlined_call_operand.hbm [shape: bf16[8,16], index: 0, kind: input, shape index: {}]   ;;  %s687_s1 = inlined_call_operand.hbm [shape: bf16[8,8], index: 1, kind: input, shape index: {}]   ;;  %s688_s2 = inlined_call_operand.hbm [shape: bf16[304,128], index: 2, kind: input, shape index: {}]   ;;  %s689_s3 = inlined_call_operand.vmem [shape: f32[8,1], index: 3, kind: output, shape index: {}]  }
   0x1   :  { %9 = vsyncpa [#allocation5], 0  ;;  %s594_s12 = smov [#allocation4]   ;;  %s595_s14 = smov [#allocation2]  }
   0x2   :  { %s26_s13 = sshll.u32 %s594_s12, 4  ;;  %s16_s15 = sshll.u32 %s595_s14, 4  ;;  %s27_s13 = int_to_ptr.vmem [resolvable:$true] %s26_s13  ;;  %s17_s15 = int_to_ptr.vmem [resolvable:$true] %s16_s15 }
   0x3   :  { %s524_s18 = scalar_lea.hbm %s687_s1, 64 }
   0x4   :  { %p525_p0 = scmp.ne.s32.totalorder %s687_s1, %s524_s18  ;;  %p528_p1 = scmp.lt.u32.totalorder %s524_s18, %s687_s1 }
   0x6   :  { %p530_p2 = pnand %p528_p1, %p525_p0 }
   0x8   :  { %533 = shalt.err (!%p530_p2)
}
   0x9   :  { %s534_s23 = scalar_lea.vmem %s27_s13, 64  ;;  %p539_p4 = scmp.lt.s32.totalorder %s27_s13, %s27_s13 }
   0xa   :  { %p535_p3 = scmp.ne.s32.totalorder %s27_s13, %s534_s23  ;;  %p540_p5 = scmp.lt.s32.totalorder %s534_s23, %s534_s23 }
   0xc   :  { %p541_p6 = por %p540_p5, %p539_p4 }
   0xe   :  { %p542_p7 = pnand %p541_p6, %p535_p3 }
  0x10   :  { %545 = shalt.err (!%p542_p7)
}
  0x11   :  { %29 = dma.hbm_to_vmem [thread:$0]  %s687_s1, 64, %s27_s13, [#allocation5]  }
  0x12   :  { %s546_s28 = scalar_lea.hbm %s686_s0, 64 }
  0x13   :  { %p547_p8 = scmp.ne.s32.totalorder %s686_s0, %s546_s28  ;;  %p550_p9 = scmp.lt.u32.totalorder %s546_s28, %s686_s0 }
  0x15   :  { %p552_p10 = pnand %p550_p9, %p547_p8 }
  0x17   :  { %555 = shalt.err (!%p552_p10)
}
  0x18   :  { %s556_s6 = scalar_lea.vmem %s17_s15, 64  ;;  %p561_p12 = scmp.lt.s32.totalorder %s17_s15, %s17_s15 }
  0x19   :  { %p557_p11 = scmp.ne.s32.totalorder %s17_s15, %s556_s6  ;;  %p562_p13 = scmp.lt.s32.totalorder %s556_s6, %s556_s6 }
  0x1b   :  { %p563_p0 = por %p562_p13, %p561_p12 }
  0x1d   :  { %p564_p1 = pnand %p563_p0, %p557_p11 }
  0x1f   :  { %567 = shalt.err (!%p564_p1)
}
  0x20   :  { %19 = dma.hbm_to_vmem [thread:$0]  %s686_s0, 64, %s17_s15, [#allocation3]  }
  0x21   :  { %s596_s8 = smov [#allocation6]   ;;  %s568_s12 = scalar_lea.hbm %s688_s2, 2432 }
  0x22   :  { %s35_s9 = sshll.u32 %s596_s8, 4  ;;  %p569_p2 = scmp.ne.s32.totalorder %s688_s2, %s568_s12  ;;  %s36_s9 = int_to_ptr.vmem [resolvable:$true] %s35_s9 }
  0x23   :  { %p572_p3 = scmp.lt.u32.totalorder %s568_s12, %s688_s2 }
  0x25   :  { %p574_p4 = pnand %p572_p3, %p569_p2 }
  0x27   :  { %577 = shalt.err (!%p574_p4)
}
  0x28   :  { %s578_s18 = scalar_lea.vmem %s36_s9, 2432  ;;  %p583_p6 = scmp.lt.s32.totalorder %s36_s9, %s36_s9 }
  0x29   :  { %p579_p5 = scmp.ne.s32.totalorder %s36_s9, %s578_s18  ;;  %p584_p7 = scmp.lt.s32.totalorder %s578_s18, %s578_s18 }
  0x2b   :  { %p585_p8 = por %p584_p7, %p583_p6 }
  0x2d   :  { %p586_p9 = pnand %p585_p8, %p579_p5 }
  0x2f   :  { %589 = shalt.err (!%p586_p9)
}
  0x30   :  { %s597_s0 = smov 64   ;;  %s598_s15 = smov 4  }
  0x31   :  { %41 = dma.hbm_to_vmem [thread:$0]  %s688_s2, 2432, %s36_s9, [#allocation5], %s597_s0, %s597_s0, %s598_s15  }
  0x32   :  { %590 = dma.done.wait [#allocation3], 64  }
  0x33   :  { %591 = vsyncadd [#allocation3], 4294967232 }
  0x34   :  { %592 = dma.done.wait [#allocation5], 2496  }
  0x35   :  { %593 = vsyncadd [#allocation5], 4294964800  ;;  %v599_v0 = vmov 0.0   ;;  %vm600_vm0 = vmmov 0   ;;  %vm95_vm1 = vcmask 1043456   ;;  %v507_v3 = vld [vmem:[#allocation6] sm:$0xff]   ;;  %v189_v20 = vlaneseq }
  0x36   :  { %448 = vmatprep.subr.bf16.mxu0 %v599_v0  ;;  %454 = vmatprep.subr.bf16.mxu1 %v599_v0  ;;  %v56_v1 = vld [vmem:[#allocation6 + $0x8] sm:$0xf]  ;;  %v53_v4 = vld [vmem:[#allocation4] sm:$0xf]  ;;  %vm91_vm2 = vcmask 64512   ;;  %vm145_vm3 = vcmask 130048  }
  0x37   :  { %450 = vmatprep.mubr.msk.bf16.mxu0 %vm600_vm0, %v599_v0  ;;  %456 = vmatprep.mubr.msk.bf16.mxu1 %vm600_vm0, %v599_v0  ;;  %v97_v2 = vsel %vm95_vm1, %v56_v1, 0  ;;  %v508_v5 = vld [vmem:[#allocation6 + $0x10] sm:$0xff]   ;;  %v52_v6 = vld [vmem:[#allocation2] sm:$0xf]  ;;  %v510_v8 = vld [vmem:[#allocation6 + $0x20] sm:$0xff]   ;;  %v190_v21 = vshrl.u32 %v189_v20, 7 }
  0x38   :  { %449 = vmatpush3.bf16.msra.mxu0 %v97_v2  ;;  %455 = vmatpush3.bf16.msra.mxu1 %v507_v3  ;;  %v509_v7 = vld [vmem:[#allocation6 + $0x18] sm:$0xff]   ;;  %v511_v9 = vld [vmem:[#allocation6 + $0x28] sm:$0xff]   ;;  %v512_v10 = vld [vmem:[#allocation6 + $0x30] sm:$0xff]   ;;  %vm399_vm4 = vcmask 7168  }
  0x39   :  { %460 = vmatprep.subr.bf16.mxu0 %v599_v0  ;;  %480 = vmatprep.subr.bf16.mxu1 %v599_v0  ;;  %v513_v11 = vld [vmem:[#allocation6 + $0x38] sm:$0xff]   ;;  %v514_v12 = vld [vmem:[#allocation6 + $0x40] sm:$0xff]   ;;  %v515_v13 = vld [vmem:[#allocation6 + $0x48] sm:$0xff]   ;;  %v191_v24 = vsub.s32 0, %v190_v21  ;;  %v198_v40 = vsub.s32 1, %v190_v21  ;;  %v292_v49 = vsub.s32 2, %v190_v21 }
  0x3a   :  { %v516_v14 = vld [vmem:[#allocation6 + $0x50] sm:$0xff]   ;;  %v517_v15 = vld [vmem:[#allocation6 + $0x58] sm:$0xff]   ;;  %v518_v16 = vld [vmem:[#allocation6 + $0x60] sm:$0xff]   ;;  %v389_v58 = vsub.s32 3, %v190_v21 }
  0x3b   :  { %451 = vmatmul.mubr.msk.bf16.vlgmr.msra.gmra.mrb[0].mxu0 %vm91_vm2, %v53_v4  ;;  %457 = vmatmul.mubr.msk.bf16.vlgmr.msra.gmra.mrb[0].mxu1 %vm145_vm3, %v52_v6  ;;  %v519_v17 = vld [vmem:[#allocation6 + $0x68] sm:$0xff]   ;;  %v520_v18 = vld [vmem:[#allocation6 + $0x70] sm:$0xff]   ;;  %v521_v19 = vld [vmem:[#allocation6 + $0x78] sm:$0xff]  }
  0x3c   :  { %461 = vmatpush3.bf16.msra.mxu0 %v508_v5  ;;  %476 = vmatprep.mubr.msk.bf16.mxu0 %vm600_vm0, %v599_v0  ;;  %v89_v22 = vld [vmem:[#allocation6 + $0x90] sm:$0xf]  ;;  %v522_v38 = vld [vmem:[#allocation6 + $0x80] sm:$0xff]   ;;  %v523_v39 = vld [vmem:[#allocation6 + $0x88] sm:$0xff]  }
  0x3d   :  { %462 = vmatprep.subr.bf16.mxu0 %v599_v0  ;;  %496 = vmatprep.mubr.msk.bf16.mxu1 %vm600_vm0, %v599_v0  ;;  %v90_v23 = vunpack.c.l.bf16 %v89_v22 }
  0x3e   :  { %481 = vmatpush3.bf16.msra.mxu1 %v516_v14 }
  0x3f   :  { %482 = vmatprep.subr.bf16.mxu1 %v599_v0  ;;  %v192_v26 = vrot.slane %v90_v23, %v191_v24  ;;  %v199_v41 = vrot.slane %v90_v23, %v198_v40  ;;  %v293_v50 = vrot.slane %v90_v23, %v292_v49  ;;  %v390_v61 = vrot.slane %v90_v23, %v389_v58 }
  0x40   :  { %463 = vmatpush3.bf16.msra.mxu0 %v509_v7 }
  0x41   :  { %464 = vmatprep.subr.bf16.mxu0 %v599_v0 }
  0x42   :  { %483 = vmatpush3.bf16.msra.mxu1 %v517_v15 }
  0x43   :  { %484 = vmatprep.subr.bf16.mxu1 %v599_v0 }
  0x44   :  { %465 = vmatpush3.bf16.msra.mxu0 %v510_v8 }
  0x45   :  { %466 = vmatprep.subr.bf16.mxu0 %v599_v0 }
  0x46   :  { %485 = vmatpush3.bf16.msra.mxu1 %v518_v16 }
  0x47   :  { %486 = vmatprep.subr.bf16.mxu1 %v599_v0 }
  0x48   :  { %467 = vmatpush3.bf16.msra.mxu0 %v511_v9 }
  0x49   :  { %468 = vmatprep.subr.bf16.mxu0 %v599_v0 }
  0x4a   :  { %487 = vmatpush3.bf16.msra.mxu1 %v519_v17 }
  0x4b   :  { %488 = vmatprep.subr.bf16.mxu1 %v599_v0 }
  0x4c   :  { %469 = vmatpush3.bf16.msra.mxu0 %v512_v10 }
  0x4d   :  { %470 = vmatprep.subr.bf16.mxu0 %v599_v0 }
  0x4e   :  { %489 = vmatpush3.bf16.msra.mxu1 %v520_v18 }
  0x4f   :  { %490 = vmatprep.subr.bf16.mxu1 %v599_v0 }
  0x50   :  { %471 = vmatpush3.bf16.msra.mxu0 %v513_v11 }
  0x51   :  { %472 = vmatprep.subr.bf16.mxu0 %v599_v0 }
  0x52   :  { %491 = vmatpush3.bf16.msra.mxu1 %v521_v19 }
  0x53   :  { %492 = vmatprep.subr.bf16.mxu1 %v599_v0 }
  0x54   :  { %473 = vmatpush3.bf16.msra.mxu0 %v514_v12 }
  0x55   :  { %474 = vmatprep.subr.bf16.mxu0 %v599_v0 }
  0x56   :  { %493 = vmatpush3.bf16.msra.mxu1 %v522_v38 }
  0x57   :  { %494 = vmatprep.subr.bf16.mxu1 %v599_v0  ;;  %v396_v0 = vsub.s32 4, %v190_v21 }
  0x58   :  { %475 = vmatpush3.bf16.msra.mxu0 %v515_v13 }
  0x59   :  { %v397_v1 = vrot.slane %v90_v23, %v396_v0 }
  0x5a   :  { %495 = vmatpush3.bf16.msra.mxu1 %v523_v39 }
 0x10e   :  { %v133_v25 = vpop.f32.mrb[0].mxu0  ;;  %v183_v28 = vpop.f32.mrb[0].mxu1 }
 0x10f   :  { %v452_v27 = vpop.f32.mrb[1].mxu0  ;;  %v184_v29 = vadd.f32 %v183_v28, %v133_v25  ;;  %v458_v31 = vpop.f32.mrb[1].mxu1 }
 0x110   :  { %v136_v30 = vpop.f32.mrb[2].mxu0  ;;  %v186_v33 = vpop.f32.mrb[2].mxu1 }
 0x111   :  { %v453_v32 = vpop.f32.mrb[3].mxu0  ;;  %v193_v34 = vadd.f32 %v192_v26, %v184_v29  ;;  %v459_v35 = vpop.f32.mrb[3].mxu1 }
 0x113   :  { %v194_v36 = vmax.f32 %v193_v34, 0.0 }
 0x115   :  { %v195_v37 = vpack.c.bf16 %v194_v36, %v194_v36 }
 0x117   :  { %477 = vmatmul.mubr.bf16.vlgmr.msra.gmra.mrb[4].mxu0 %v195_v37 }
 0x1ea   :  { %v282_v42 = vpop.f32.mrb[4].mxu0 }
 0x1eb   :  { %v283_v43 = vadd.f32 %v282_v42, %v199_v41  ;;  %v478_v44 = vpop.f32.mrb[5].mxu0 }
 0x1ec   :  { %v285_v45 = vpop.f32.mrb[6].mxu0 }
 0x1ed   :  { %v288_v46 = vmax.f32 %v283_v43, 0.0  ;;  %v479_v47 = vpop.f32.mrb[7].mxu0 }
 0x1ef   :  { %v289_v48 = vpack.c.bf16 %v288_v46, %v288_v46 }
 0x1f1   :  { %497 = vmatmul.mubr.bf16.vlgmr.msra.gmra.mrb[4].mxu1 %v289_v48 }
 0x2c4   :  { %v376_v51 = vpop.f32.mrb[4].mxu1 }
 0x2c5   :  { %v377_v52 = vadd.f32 %v376_v51, %v293_v50  ;;  %v498_v53 = vpop.f32.mrb[5].mxu1 }
 0x2c6   :  { %v379_v54 = vpop.f32.mrb[6].mxu1 }
 0x2c7   :  { %v382_v55 = vadd.f32 3.0, %v377_v52  ;;  %v499_v56 = vpop.f32.mrb[7].mxu1 }
 0x2c9   :  { %v383_v57 = vmax.f32 %v382_v55, 0.0 }
 0x2cb   :  { %v384_v59 = vmin.f32 %v383_v57, 6.0 }
 0x2cd   :  { %v385_v60 = vmul.f32 %v384_v59, %v377_v52 }
 0x2cf   :  { %v386_v62 = vmul.f32 0.16666667, %v385_v60 }
 0x2d1   :  { %v391_v63 = vmul.f32 %v390_v61, %v386_v62 }
 0x2d3   :  { %392 = vadd.xlane.f32.xlu0 %v391_v63 }
 0x360   :  { %v393_v2 = vpop.xlane.xlu0 %392 }
 0x361   :  { %v398_v3 = vadd.f32 %v397_v1, %v393_v2 }
 0x363   :  { %400 = vst.msk [vmem:[%s689_s3] sm:$0xff] %vm399_vm4, %v398_v3 }
 0x364   :  { %405 = vsyncpa [#allocation3], 1 }
 0x365   :  { %406 = vsyncpa [#allocation5], 1 }

</bundles_post_ra>
